<compile_context>
chip_gen: v5e
topology: v5e:2x2
jax: 0.10.0
libtpu: 0.0.40
codegen_flags: <defaults>
</compile_context>

<pallas_src>
import jax
import jax.numpy as jnp
from jax.experimental import pallas as pl
from jax.experimental.pallas import tpu as pltpu


def _round_up(x, m):
    return ((x + m - 1) // m) * m


def _vmem_capacity_bytes():
    """Physical VMEM of the local chip; conservative v7x fallback (64 MiB)."""
    try:
        info = pltpu.get_tpu_info()
        cap = getattr(info, "vmem_capacity_bytes", None)
        if cap:
            return int(cap)
    except Exception:
        pass
    return 64 * 1024 * 1024


def _vmem_usage_bytes(tm, tn, tk, in_itemsize, out_itemsize=4):
    """Double-buffered x/W/bias input tiles + double-buffered output block."""
    return (2 * tm * tk * in_itemsize       # x tiles
            + 2 * tk * tn * in_itemsize     # W tiles
            + 2 * 8 * tn * 4                # bias tiles (padded to 8 sublanes)
            + 2 * tm * tn * out_itemsize)   # f32 output block


def _pick_tiles(B, K, N, compute_dtype, vmem_budget, tm, tn, tk):
    in_sz = jnp.dtype(compute_dtype).itemsize
    # bf16 packs two rows per sublane -> keep the M tile a multiple of 16.
    sub = 16 if in_sz == 2 else 8
    tm = min(tm if tm else 1024, _round_up(B, sub))
    tn = min(tn if tn else 1024, _round_up(N, 128))
    tk = min(tk if tk else 1024, _round_up(K, 128))
    # Shrink until the double-buffered working set fits the VMEM budget.
    while _vmem_usage_bytes(tm, tn, tk, in_sz) > vmem_budget:
        if tk > 512 and tk >= max(tm, tn):
            tk //= 2
        elif tm >= tn and tm > 128:
            tm //= 2
        elif tn > 128:
            tn //= 2
        else:
            break
    return tm, tn, tk


def _linear_kernel(x_ref, w_ref, b_ref, o_ref):
    """One (tm, tn) output tile; K is the innermost ("arbitrary") grid axis.

    x_ref: (tm, tk)  activation tile (compute dtype, e.g. bf16)
    w_ref: (tk, tn)  weight tile, already transposed to (K, N) in the wrapper
    b_ref: (1, tn)   bias tile (f32)
    o_ref: (tm, tn)  f32 output tile — resident across the K axis, used as the
                     accumulator (initialized with the bias at k == 0).
    """
    k = pl.program_id(2)

    @pl.when(k == 0)
    def _():
        o_ref[...] = jnp.broadcast_to(b_ref[...], o_ref.shape).astype(o_ref.dtype)

    o_ref[...] += jnp.dot(x_ref[...], w_ref[...],
                          preferred_element_type=jnp.float32).astype(o_ref.dtype)


def linear_forward(x, weight, bias, *, tm=None, tn=None, tk=None,
                   compute_dtype=jnp.bfloat16):
    """nn.Linear forward: y = x @ weight.T + bias (fp32 output).

    x: (B, K), weight: (N, K) PyTorch layout, bias: (N,).
    MXU operands are cast to `compute_dtype` (bf16) with f32 accumulation.
    """
    B, K = x.shape
    N, K2 = weight.shape
    assert K == K2 and bias.shape == (N,)
    out_dtype = jnp.float32
    in_sz = jnp.dtype(compute_dtype).itemsize

    vmem_cap = _vmem_capacity_bytes()
    tm, tn, tk = _pick_tiles(B, K, N, compute_dtype,
                             vmem_budget=int(vmem_cap * 0.7),
                             tm=tm, tn=tn, tk=tk)

    Bp = _round_up(B, tm)
    Np = _round_up(N, tn)
    Kp = _round_up(K, tk)

    # Pad only when needed; the pad / bf16 cast / one-time (N,K)->(K,N) weight
    # transpose are fusible XLA ops and allow_input_fusion lets XLA pull them
    # into the kernel's input DMA rather than a separate HBM pre-pass.
    xp = x if (Bp == B and Kp == K) else jnp.pad(x, ((0, Bp - B), (0, Kp - K)))
    xp = xp.astype(compute_dtype)
    wt = weight.T                                     # (K, N): MXU-friendly RHS
    wp = wt if (Kp == K and Np == N) else jnp.pad(wt, ((0, Kp - K), (0, Np - N)))
    wp = wp.astype(compute_dtype)
    bp = bias if Np == N else jnp.pad(bias, (0, Np - N))
    bp = bp.astype(jnp.float32).reshape(1, Np)

    grid = (Bp // tm, Np // tn, Kp // tk)
    n_i, n_j, _ = grid

    cost = pl.CostEstimate(
        flops=2 * Bp * Kp * Np,
        transcendentals=0,
        bytes_accessed=(n_j * Bp * Kp * in_sz        # x re-read once per N tile
                        + n_i * Kp * Np * in_sz      # W re-read once per M tile
                        + n_i * Np * 4               # bias
                        + Bp * Np * 4),              # output write
    )

    needed = _vmem_usage_bytes(tm, tn, tk, in_sz)
    vmem_limit = int(min(vmem_cap * 0.9,
                         max(32 * 1024 * 1024, needed + needed // 2)))

    yp = pl.pallas_call(
        _linear_kernel,
        out_shape=jax.ShapeDtypeStruct((Bp, Np), out_dtype),
        grid_spec=pltpu.PrefetchScalarGridSpec(
            num_scalar_prefetch=0,
            grid=grid,
            in_specs=[
                pl.BlockSpec((tm, tk), lambda i, j, k: (i, k)),   # x
                pl.BlockSpec((tk, tn), lambda i, j, k: (k, j)),   # W^T (K, N)
                pl.BlockSpec((1, tn), lambda i, j, k: (0, j)),    # bias
            ],
            out_specs=pl.BlockSpec((tm, tn), lambda i, j, k: (i, j)),
        ),
        compiler_params=pltpu.CompilerParams(
            dimension_semantics=("parallel", "parallel", "arbitrary"),
            vmem_limit_bytes=vmem_limit,
            allow_input_fusion=[True, True, True],
        ),
        cost_estimate=cost,
    )(xp, wp, bp)

    return yp[:B, :N]


if __name__ == "__main__":
    # Deterministic synthetic params/inputs (shapes implied by LinearRegression).
    batch, input_dim, output_dim = 8, 32, 16
    key = jax.random.PRNGKey(0)
    kx, kw, kb = jax.random.split(key, 3)

    x = jax.random.normal(kx, (batch, input_dim), dtype=jnp.float32)
    bound = 1.0 / (input_dim ** 0.5)     # nn.Linear default init scale
    weight = jax.random.uniform(kw, (output_dim, input_dim),
                                minval=-bound, maxval=bound, dtype=jnp.float32)
    bias = jax.random.uniform(kb, (output_dim,),
                              minval=-bound, maxval=bound, dtype=jnp.float32)

    y = linear_forward(x, weight, bias)
    y = jax.block_until_ready(y)

    # Reference on the same bf16-cast operands (MXU accumulates in f32).
    xr = x.astype(jnp.bfloat16).astype(jnp.float32)
    wr = weight.astype(jnp.bfloat16).astype(jnp.float32)
    y_ref = xr @ wr.T + bias

    assert y.shape == (batch, output_dim)
    assert jnp.allclose(y, y_ref, atol=1e-4, rtol=1e-4), (
        float(jnp.max(jnp.abs(y - y_ref))))
    print("KERNEL_OK")
</pallas_src>

<mosaic_0001>
module attributes {stable_mosaic.version = 11 : i64} {
  func.func @_linear_kernel(%arg0: i32, %arg1: i32, %arg2: i32, %arg3: memref<16x128xbf16, #tpu.memory_space<vmem>>, %arg4: memref<128x128xbf16, #tpu.memory_space<vmem>>, %arg5: memref<1x128xf32, #tpu.memory_space<vmem>>, %arg6: memref<16x128xf32, #tpu.memory_space<vmem>>) attributes {dimension_semantics = [#tpu.dimension_semantics<parallel>, #tpu.dimension_semantics<parallel>, #tpu.dimension_semantics<arbitrary>], iteration_bounds = array<i64: 1, 1, 1>, scalar_prefetch = 0 : i64, scratch_operands = 0 : i64, tpu.core_type = #tpu.core_type<tc>, window_params = [{transform_indices = @transform_0, window_bounds = array<i64: 16, 128>}, {transform_indices = @transform_1, window_bounds = array<i64: 128, 128>}, {transform_indices = @transform_2, window_bounds = array<i64: 1, 128>}, {transform_indices = @transform_3, window_bounds = array<i64: 16, 128>}]} {
    %c0_i32 = arith.constant 0 : i32
    %0 = arith.cmpi eq, %arg2, %c0_i32 : i32
    %1 = arith.extui %0 : i1 to i32
    %c0_i32_0 = arith.constant 0 : i32
    %2 = arith.cmpi ne, %1, %c0_i32_0 : i32
    scf.if %2 {
      %c0_8 = arith.constant 0 : index
      %c0_9 = arith.constant 0 : index
      %9 = vector.load %arg5[%c0_8, %c0_9] : memref<1x128xf32, #tpu.memory_space<vmem>>, vector<1x128xf32>
      %10 = vector.shape_cast %9 : vector<1x128xf32> to vector<1x128xf32>
      %11 = vector.broadcast %10 : vector<1x128xf32> to vector<16x128xf32>
      %c0_10 = arith.constant 0 : index
      %c0_11 = arith.constant 0 : index
      %12 = vector.load %arg6[%c0_10, %c0_11] : memref<16x128xf32, #tpu.memory_space<vmem>>, vector<16x128xf32>
      tpu.vector_store %arg6[%c0_10, %c0_11], %11 {strides = array<i32>} : memref<16x128xf32, #tpu.memory_space<vmem>>, vector<16x128xf32>,
    } else {
    }
    %c0 = arith.constant 0 : index
    %c0_1 = arith.constant 0 : index
    %3 = vector.load %arg6[%c0, %c0_1] : memref<16x128xf32, #tpu.memory_space<vmem>>, vector<16x128xf32>
    %c0_2 = arith.constant 0 : index
    %c0_3 = arith.constant 0 : index
    %4 = vector.load %arg3[%c0_2, %c0_3] : memref<16x128xbf16, #tpu.memory_space<vmem>>, vector<16x128xbf16>
    %c0_4 = arith.constant 0 : index
    %c0_5 = arith.constant 0 : index
    %5 = vector.load %arg4[%c0_4, %c0_5] : memref<128x128xbf16, #tpu.memory_space<vmem>>, vector<128x128xbf16>
    %cst = arith.constant dense<0.000000e+00> : vector<16x128xf32>
    %6 = tpu.matmul %4, %5, %cst {dimension_numbers = #tpu.dot_dimension_numbers<[1], [0], [0], [1], [0, 0, 1, 1], [], []>} : vector<16x128xbf16>, vector<128x128xbf16>, vector<16x128xf32> -> vector<16x128xf32>
    %7 = arith.addf %3, %6 : vector<16x128xf32>
    %c0_6 = arith.constant 0 : index
    %c0_7 = arith.constant 0 : index
    %8 = vector.load %arg6[%c0_6, %c0_7] : memref<16x128xf32, #tpu.memory_space<vmem>>, vector<16x128xf32>
    tpu.vector_store %arg6[%c0_6, %c0_7], %7 {strides = array<i32>} : memref<16x128xf32, #tpu.memory_space<vmem>>, vector<16x128xf32>,
    return
  }
  func.func @transform_0(%arg0: i32, %arg1: i32, %arg2: i32) -> (i32, i32) {
    %c0_i32 = arith.constant 0 : i32
    return %arg0, %arg2 : i32, i32
  }
  func.func @transform_1(%arg0: i32, %arg1: i32, %arg2: i32) -> (i32, i32) {
    %c0_i32 = arith.constant 0 : i32
    return %arg2, %arg1 : i32, i32
  }
  func.func @transform_2(%arg0: i32, %arg1: i32, %arg2: i32) -> (i32, i32) {
    %c0_i32 = arith.constant 0 : i32
    %c0_i32_0 = arith.constant 0 : i32
    return %c0_i32, %arg1 : i32, i32
  }
  func.func @transform_3(%arg0: i32, %arg1: i32, %arg2: i32) -> (i32, i32) {
    %c0_i32 = arith.constant 0 : i32
    return %arg0, %arg1 : i32, i32
  }
}

</mosaic_0001>

<bundles_post_ra>
// kernel: tpu_custom_call.1
= control target key start
LH: loop header
LB: loop body
LE: loop exit
PB: predicated region body
PF: predicated region fallthrough
CT: control target
= control target key end

     0   :  { %8 = vsyncpa [#allocation3], 0  ;;  %s339_s0 = inlined_call_operand.hbm [shape: bf16[16,128], index: 0, kind: input, shape index: {}]   ;;  %s340_s1 = inlined_call_operand.hbm [shape: bf16[128,128], index: 1, kind: input, shape index: {}]   ;;  %s341_s2 = inlined_call_operand.vmem [shape: f32[1,128], index: 2, kind: input, shape index: {}]   ;;  %s342_s3 = inlined_call_operand.hbm [shape: f32[16,128], index: 3, kind: output, shape index: {}]  }
   0x1   :  { %9 = vsyncpa [#allocation6], 0 }
   0x2   :  { %10 = vsyncpa [#allocation4], 0  ;;  %s15_s14 = sshll.u32 %s339_s0, 4  ;;  %s300_s15 = smov [#allocation2]   ;;  %s16_s14 = int_to_ptr.hbm [resolvable:$true] %s15_s14 }
   0x3   :  { %s17_s16 = sshll.u32 %s300_s15, 4  ;;  %s28_s19 = sshll.u32 %s340_s1, 4  ;;  %s18_s16 = int_to_ptr.vmem [resolvable:$true] %s17_s16  ;;  %s29_s19 = int_to_ptr.hbm [resolvable:$true] %s28_s19 }
   0x4   :  { %s301_s20 = smov 64   ;;  %s302_s21 = smov 4  }
   0x5   :  { %23 = dma.hbm_to_vmem [thread:$0]  %s16_s14, 128, %s18_s16, [#allocation3], %s301_s20, %s301_s20, %s302_s21  }
   0x6   :  { %s303_s22 = smov [#allocation5]  }
   0x7   :  { %s30_s23 = sshll.u32 %s303_s22, 4  ;;  %s31_s23 = int_to_ptr.vmem [resolvable:$true] %s30_s23 }
   0x8   :  { %36 = dma.hbm_to_vmem [thread:$0]  %s29_s19, 1024, %s31_s23, [#allocation6], %s301_s20, %s301_s20, %s302_s21  }
   0x9   :  { %294 = dma.done.wait [#allocation3], 128  }
   0xa   :  { %295 = vsyncadd [#allocation3], 4294967168 }
   0xb   :  { %296 = dma.done.wait [#allocation6], 1024  }
   0xc   :  { %297 = vsyncadd [#allocation6], 4294966272  ;;  %v213_v0 = vld [vmem:[#allocation5 + $0x38] sm:$0xff]  ;;  %v212_v1 = vld [vmem:[#allocation5 + $0x30] sm:$0xff]  ;;  %s304_s24 = smov [#allocation7]   ;;  %s155_s28 = sshll.u32 %s342_s3, 4  ;;  %s156_s28 = int_to_ptr.hbm [resolvable:$true] %s155_s28 }
   0xd   :  { %131 = vmatpush.bf16.msra.mxu0 %v213_v0  ;;  %v211_v2 = vld [vmem:[#allocation5 + $0x28] sm:$0xff]  ;;  %v210_v3 = vld [vmem:[#allocation5 + $0x20] sm:$0xff]  ;;  %v209_v4 = vld [vmem:[#allocation5 + $0x18] sm:$0xff]  ;;  %s153_s25 = sshll.u32 %s304_s24, 4  ;;  %s305_s29 = smov 128   ;;  %s154_s25 = int_to_ptr.vmem [resolvable:$true] %s153_s25 }
   0xe   :  { %v208_v5 = vld [vmem:[#allocation5 + $0x10] sm:$0xff]  ;;  %v207_v6 = vld [vmem:[#allocation5 + $0x8] sm:$0xff]  ;;  %v206_v7 = vld [vmem:[#allocation5] sm:$0xff]  ;;  %s306_s30 = smov 8  }
   0xf   :  { %v205_v8 = vld [vmem:[#allocation2] sm:$0xff] }
  0x10   :  { %v221_v9 = vld [vmem:[%s341_s2] ss:$0 sm:$0xff] }
  0x11   :  { %132 = vmatpush.bf16.msra.mxu0 %v212_v1 }
  0x15   :  { %133 = vmatpush.bf16.msra.mxu0 %v211_v2 }
  0x19   :  { %134 = vmatpush.bf16.msra.mxu0 %v210_v3 }
  0x1d   :  { %135 = vmatpush.bf16.msra.mxu0 %v209_v4 }
  0x21   :  { %136 = vmatpush.bf16.msra.mxu0 %v208_v5 }
  0x25   :  { %137 = vmatpush.bf16.msra.mxu0 %v207_v6 }
  0x29   :  { %138 = vmatpush.bf16.msra.mxu0 %v206_v7 }
  0x2c   :  { %139 = vmatmul.bf16.vlgmr.msra.gmra.mxu0 %v205_v8 }
  0xa9   :  { %v140_v10 = vpop.f32.mrf.mxu0 }
  0xaa   :  { %v145_v11 = vadd.f32 %v221_v9, %v140_v10 }
  0xac   :  { %147 = vst [vmem:[#allocation7] sm:$0xff] %v145_v11 }
  0xb1   :  { %v142_v12 = vpop.f32.mrf.mxu0 }
  0xb2   :  { %v146_v13 = vadd.f32 %v221_v9, %v142_v12 }
  0xb4   :  { %148 = vst [vmem:[#allocation7 + $0x8] sm:$0xff] %v146_v13 }
  0xb5   :  { %161 = dma.vmem_to_hbm [thread:$0]  %s154_s25, 256, %s156_s28, [#allocation4], %s305_s29, %s305_s29, %s306_s30  }
  0xb6   :  { %298 = dma.done.wait [#allocation4], 256  }
  0xb7   :  { %299 = vsyncadd [#allocation4], 4294967040 }
  0xb8   :  { %166 = vsyncpa [#allocation3], 1 }
  0xb9   :  { %167 = vsyncpa [#allocation6], 1 }
  0xba   :  { %168 = vsyncpa [#allocation4], 1 }

</bundles_post_ra>
